<compile_context>
chip_gen: v7x
topology: tpu7x:2x2x1
jax: 0.10.0
libtpu: 0.0.40
codegen_flags: <defaults>
</compile_context>

<pallas_src>
import functools

import jax
import jax.numpy as jnp
from jax.experimental import pallas as pl
from jax.experimental.pallas import tpu as pltpu


def _pair(v):
    return (v, v) if isinstance(v, int) else tuple(v)


def _quadruple(v):
    return (v, v, v, v) if isinstance(v, int) else tuple(v)


# ---------------------------------------------------------------------------
# Kernel
# ---------------------------------------------------------------------------

def _shift_reflect(v, axis, up):
    """Shift by one along `axis` with 1-pixel reflect boundaries.

    up=True : out[i] = v[i-1] for i >= 1,  out[0]   = v[1]    (tap above/left)
    up=False: out[i] = v[i+1] for i < n-1, out[n-1] = v[n-2]  (tap below/right)

    Lowers to an XLU lane/sublane shift (tpu.concatenate) which co-issues with
    the VALU min/max that dominate this kernel.
    """
    n = v.shape[axis]

    def sl(a, b):
        idx = [slice(None)] * v.ndim
        idx[axis] = slice(a, b)
        return v[tuple(idx)]

    if up:
        return jnp.concatenate([sl(1, 2), sl(0, n - 1)], axis=axis)
    return jnp.concatenate([sl(1, n), sl(n - 2, n - 1)], axis=axis)


def _median3x3_kernel(x_ref, o_ref, *, h_axis, w_axis):
    """3x3 / stride-1 median with fused reflect padding on one VMEM block.

    Axis-generic: NCHW blocks use h_axis=1, w_axis=2; channels-last blocks use
    h_axis=0, w_axis=1.  Only min/max selections are used, so results are
    exact in every dtype (incl. native bf16, no upcasts).
    """
    x = x_ref[...]

    # Vertical pass: sort the 3-tall column at every pixel once; shared by the
    # three overlapping horizontal windows (the ~2x VALU saving).
    a = _shift_reflect(x, h_axis, up=True)
    c = _shift_reflect(x, h_axis, up=False)
    ax_min = jnp.minimum(a, x)
    ax_max = jnp.maximum(a, x)
    lo = jnp.minimum(ax_min, c)                          # column minimum
    hi = jnp.maximum(ax_max, c)                          # column maximum
    mid = jnp.maximum(ax_min, jnp.minimum(ax_max, c))    # column median

    # Horizontal pass: combine the three neighbouring columns of lo/mid/hi.
    def taps(v):
        return (_shift_reflect(v, w_axis, up=True), v,
                _shift_reflect(v, w_axis, up=False))

    l0, l1, l2 = taps(lo)
    h0, h1, h2 = taps(hi)
    m0, m1, m2 = taps(mid)

    max_lo = jnp.maximum(jnp.maximum(l0, l1), l2)
    min_hi = jnp.minimum(jnp.minimum(h0, h1), h2)
    med_mid = jnp.maximum(jnp.minimum(m0, m1),
                          jnp.minimum(jnp.maximum(m0, m1), m2))

    med9 = jnp.maximum(jnp.minimum(max_lo, med_mid),
                       jnp.minimum(jnp.maximum(max_lo, med_mid), min_hi))
    o_ref[...] = med9.astype(o_ref.dtype)


# ---------------------------------------------------------------------------
# Hardware-aware sizing
# ---------------------------------------------------------------------------

# Per-grid-step working set, in units of one I/O block: 4 double-buffered I/O
# blocks + a conservative allowance (~14) for the block-sized temporaries
# Mosaic materializes for the shifted taps.
_LIVE_BLOCKS = 18
_MAX_BLOCK_BYTES = 8 * 1024 * 1024    # well past the DMA-efficiency plateau


def _vmem_limit_bytes():
    """Scoped-VMEM limit: a safe fraction of the detected physical VMEM.

    v5e/v6e: 128 MiB physical -> ~96 MiB limit (vs the 32 MiB default);
    v7x:      64 MiB physical -> ~48 MiB.  Falls back to the v7x figure if the
    query is unavailable so the setting never exceeds physical VMEM.
    """
    cap = 64 * 1024 * 1024
    try:
        cap = int(pltpu.get_tpu_info().vmem_capacity_bytes)
    except Exception:
        pass
    return int(min(cap * 3 // 4, 100 * 1024 * 1024))


def _num_tensorcores():
    """TensorCores per chip (2 on v7x megacore); only used to keep at least
    that many grid steps so dimension_semantics=("parallel",) feeds all cores."""
    try:
        info = pltpu.get_tpu_info()
        for name in ("num_cores", "num_tensorcores", "tensorcore_count"):
            val = getattr(info, name, None)
            if val:
                return int(val)
    except Exception:
        pass
    return 2


# ---------------------------------------------------------------------------
# Wrapper
# ---------------------------------------------------------------------------

def _median_pool2d_xla(x, kh, kw, sh, sw, pads):
    """Pure-XLA median pool (torch lower-median semantics); fallback path and
    test reference."""
    p_l, p_r, p_t, p_b = pads
    xp = jnp.pad(x, ((0, 0), (0, 0), (p_t, p_b), (p_l, p_r)), mode="reflect")
    Hp, Wp = xp.shape[2], xp.shape[3]
    Ho = (Hp - kh) // sh + 1
    Wo = (Wp - kw) // sw + 1
    wins = jnp.stack(
        [xp[:, :, di:di + sh * (Ho - 1) + 1:sh, dj:dj + sw * (Wo - 1) + 1:sw]
         for di in range(kh) for dj in range(kw)],
        axis=-1)
    return jnp.sort(wins, axis=-1)[..., (kh * kw - 1) // 2]


def median_pool2d(x, kernel_size=3, stride=1, padding=1, same=False):
    """JAX/Pallas equivalent of MedianPool2d.forward (NCHW input)."""
    kh, kw = _pair(kernel_size)
    sh, sw = _pair(stride)
    N, C, H, W = x.shape

    if same:
        ph = max(kh - sh, 0) if H % sh == 0 else max(kh - H % sh, 0)
        pw = max(kw - sw, 0) if W % sw == 0 else max(kw - W % sw, 0)
        p_l = pw // 2
        p_r = pw - p_l
        p_t = ph // 2
        p_b = ph - p_t
    else:
        p_l, p_r, p_t, p_b = _quadruple(padding)

    # Same constraint as torch's reflect padding.
    if p_t >= H or p_b >= H or p_l >= W or p_r >= W:
        raise ValueError("reflect padding must be smaller than the input dims")

    pads = (p_l, p_r, p_t, p_b)
    if (kh, kw) != (3, 3) or (sh, sw) != (1, 1) or pads != (1, 1, 1, 1) \
            or H < 2 or W < 2:
        # TODO(synk): only the module's default 3x3 / stride-1 / pad-1 config
        # is lowered to the fused-padding Pallas kernel; other configs stay on
        # the exact XLA path.
        return _median_pool2d_xla(x, kh, kw, sh, sw, pads)

    NC = N * C
    itemsize = x.dtype.itemsize
    plane_bytes = H * W * itemsize
    vmem_limit = _vmem_limit_bytes()
    block_budget = min(vmem_limit // _LIVE_BLOCKS, _MAX_BLOCK_BYTES)

    if plane_bytes > block_budget:
        # TODO(synk): very large single (H, W) planes need an H-strip grid
        # axis with a 2-row halo (overlapping strips via manual
        # make_async_copy); fall back to XLA rather than blow the VMEM limit.
        return _median_pool2d_xla(x, kh, kw, sh, sw, pads)

    compiler_params = pltpu.CompilerParams(
        dimension_semantics=("parallel",),
        vmem_limit_bytes=vmem_limit,
    )
    n_cores = _num_tensorcores()

    # Layout choice: W sits on the 128-lane axis in the natural NCHW layout.
    # When W fills the lanes poorly (e.g. W=16 -> 12.5% lane / store
    # utilization) and there are enough channels to fill the lanes instead,
    # switch to channels-last (H, W, NC) so every vreg and every store is
    # lane-dense.  Costs one XLA transpose each way, so only taken when the
    # utilization win is at least 2x.
    lane_util_w = W / (-(-W // 128) * 128)
    use_channels_last = (
        NC >= 128
        and lane_util_w <= 0.5
        and 128 * plane_bytes <= block_budget
        and (NC % 128 == 0 or NC * plane_bytes <= block_budget)
    )

    if use_channels_last:
        x_cl = jnp.transpose(x.reshape(NC, H, W), (1, 2, 0))      # (H, W, NC)
        if NC % 128 == 0:
            tc = (block_budget // plane_bytes) // 128 * 128
            tc = int(max(128, min(tc, NC)))
            if n_cores > 1 and NC >= 128 * n_cores:
                # Keep >= n_cores grid steps so every TensorCore gets work.
                tc = min(tc, max(128, (NC // n_cores) // 128 * 128))
        else:
            tc = NC    # whole channel axis in one (budget-checked) block
        grid = (pl.cdiv(NC, tc),)
        kernel = functools.partial(_median3x3_kernel, h_axis=0, w_axis=1)
        out_cl = pl.pallas_call(
            kernel,
            out_shape=jax.ShapeDtypeStruct((H, W, NC), x.dtype),
            grid_spec=pltpu.PrefetchScalarGridSpec(
                num_scalar_prefetch=0,
                grid=grid,
                in_specs=[pl.BlockSpec((H, W, tc), lambda i: (0, 0, i))],
                out_specs=pl.BlockSpec((H, W, tc), lambda i: (0, 0, i)),
            ),
            compiler_params=compiler_params,
        )(x_cl)
        return jnp.transpose(out_cl, (2, 0, 1)).reshape(N, C, H, W)

    # Natural NCHW layout: batch TB channel slices per grid step so DMAs are
    # large and the ~0.35us per-step overhead amortizes; pl.cdiv + a masked
    # ragged last block instead of requiring TB to divide N*C.
    x_flat = x.reshape(NC, H, W)
    tb = int(max(1, min(NC, block_budget // plane_bytes)))
    if n_cores > 1 and NC >= n_cores:
        tb = min(tb, max(1, NC // n_cores))
    grid = (pl.cdiv(NC, tb),)
    kernel = functools.partial(_median3x3_kernel, h_axis=1, w_axis=2)
    out_flat = pl.pallas_call(
        kernel,
        out_shape=jax.ShapeDtypeStruct((NC, H, W), x.dtype),
        grid_spec=pltpu.PrefetchScalarGridSpec(
            num_scalar_prefetch=0,
            grid=grid,
            in_specs=[pl.BlockSpec((tb, H, W), lambda i: (i, 0, 0))],
            out_specs=pl.BlockSpec((tb, H, W), lambda i: (i, 0, 0)),
        ),
        compiler_params=compiler_params,
    )(x_flat)
    return out_flat.reshape(N, C, H, W)


if __name__ == "__main__":
    key = jax.random.PRNGKey(0)
    k0, k1, k2, k3, k4 = jax.random.split(key, 5)

    # 1) Module-default config at the spec'd small shape (NCHW Pallas path).
    x = jax.random.normal(k0, (2, 4, 16, 16), dtype=jnp.float32)
    out = jax.block_until_ready(
        median_pool2d(x, kernel_size=3, stride=1, padding=1, same=False))
    ref = _median_pool2d_xla(x, 3, 3, 1, 1, (1, 1, 1, 1))
    assert out.shape == (2, 4, 16, 16), out.shape
    assert jnp.array_equal(out, ref), "f32 NCHW-path mismatch vs reference"

    # 2) Odd, unaligned spatial shape stays exact.
    x2 = jax.random.normal(k1, (1, 3, 11, 13), dtype=jnp.float32)
    out2 = jax.block_until_ready(median_pool2d(x2))
    ref2 = _median_pool2d_xla(x2, 3, 3, 1, 1, (1, 1, 1, 1))
    assert out2.shape == (1, 3, 11, 13), out2.shape
    assert jnp.array_equal(out2, ref2), "odd-shape mismatch vs reference"

    # 3) N*C not divisible by the channel batch -> ragged (masked) last block.
    x3 = jax.random.normal(k2, (1, 5, 16, 16), dtype=jnp.float32)
    out3 = jax.block_until_ready(median_pool2d(x3))
    ref3 = _median_pool2d_xla(x3, 3, 3, 1, 1, (1, 1, 1, 1))
    assert jnp.array_equal(out3, ref3), "ragged-grid mismatch vs reference"

    # 4) Many channels, lane-sparse W -> lane-dense channels-last path.
    x4 = jax.random.normal(k3, (2, 128, 16, 16), dtype=jnp.float32)
    out4 = jax.block_until_ready(median_pool2d(x4))
    ref4 = _median_pool2d_xla(x4, 3, 3, 1, 1, (1, 1, 1, 1))
    assert jnp.array_equal(out4, ref4), "channels-last-path mismatch vs reference"

    # 5) bf16 stays native (no upcasts) and exact (min/max selections only).
    x5 = jax.random.normal(k4, (2, 4, 16, 16), dtype=jnp.float32).astype(jnp.bfloat16)
    out5 = jax.block_until_ready(median_pool2d(x5))
    ref5 = _median_pool2d_xla(x5, 3, 3, 1, 1, (1, 1, 1, 1))
    assert out5.dtype == jnp.bfloat16
    assert jnp.array_equal(out5, ref5), "bf16 mismatch vs reference"

    print("KERNEL_OK")
</pallas_src>

<mosaic_0001>
module attributes {stable_mosaic.version = 11 : i64} {
  func.func @_median3x3_kernel(%arg0: i32, %arg1: memref<4x16x16xf32, #tpu.memory_space<vmem>>, %arg2: memref<4x16x16xf32, #tpu.memory_space<vmem>>) attributes {dimension_semantics = [#tpu.dimension_semantics<parallel>], iteration_bounds = array<i64: 2>, scalar_prefetch = 0 : i64, scratch_operands = 0 : i64, tpu.core_type = #tpu.core_type<tc>, window_params = [{transform_indices = @transform_0, window_bounds = array<i64: 4, 16, 16>}, {transform_indices = @transform_1, window_bounds = array<i64: 4, 16, 16>}]} {
    %c0 = arith.constant 0 : index
    %c0_0 = arith.constant 0 : index
    %c0_1 = arith.constant 0 : index
    %0 = vector.load %arg1[%c0, %c0_0, %c0_1] : memref<4x16x16xf32, #tpu.memory_space<vmem>>, vector<4x16x16xf32>
    %1 = vector.extract_strided_slice %0 {offsets = [0, 1, 0], sizes = [4, 1, 16], strides = [1, 1, 1]} : vector<4x16x16xf32> to vector<4x1x16xf32>
    %2 = vector.extract_strided_slice %0 {offsets = [0, 0, 0], sizes = [4, 15, 16], strides = [1, 1, 1]} : vector<4x16x16xf32> to vector<4x15x16xf32>
    %3 = tpu.concatenate %1, %2 in 1 : vector<4x1x16xf32>, vector<4x15x16xf32> -> vector<4x16x16xf32>
    %4 = vector.extract_strided_slice %0 {offsets = [0, 1, 0], sizes = [4, 15, 16], strides = [1, 1, 1]} : vector<4x16x16xf32> to vector<4x15x16xf32>
    %5 = vector.extract_strided_slice %0 {offsets = [0, 14, 0], sizes = [4, 1, 16], strides = [1, 1, 1]} : vector<4x16x16xf32> to vector<4x1x16xf32>
    %6 = tpu.concatenate %4, %5 in 1 : vector<4x15x16xf32>, vector<4x1x16xf32> -> vector<4x16x16xf32>
    %7 = arith.minimumf %3, %0 : vector<4x16x16xf32>
    %8 = arith.maximumf %3, %0 : vector<4x16x16xf32>
    %9 = arith.minimumf %7, %6 : vector<4x16x16xf32>
    %10 = arith.maximumf %8, %6 : vector<4x16x16xf32>
    %11 = arith.minimumf %8, %6 : vector<4x16x16xf32>
    %12 = arith.maximumf %7, %11 : vector<4x16x16xf32>
    %13 = vector.extract_strided_slice %9 {offsets = [0, 0, 1], sizes = [4, 16, 1], strides = [1, 1, 1]} : vector<4x16x16xf32> to vector<4x16x1xf32>
    %14 = vector.extract_strided_slice %9 {offsets = [0, 0, 0], sizes = [4, 16, 15], strides = [1, 1, 1]} : vector<4x16x16xf32> to vector<4x16x15xf32>
    %15 = tpu.concatenate %13, %14 in 2 : vector<4x16x1xf32>, vector<4x16x15xf32> -> vector<4x16x16xf32>
    %16 = vector.extract_strided_slice %9 {offsets = [0, 0, 1], sizes = [4, 16, 15], strides = [1, 1, 1]} : vector<4x16x16xf32> to vector<4x16x15xf32>
    %17 = vector.extract_strided_slice %9 {offsets = [0, 0, 14], sizes = [4, 16, 1], strides = [1, 1, 1]} : vector<4x16x16xf32> to vector<4x16x1xf32>
    %18 = tpu.concatenate %16, %17 in 2 : vector<4x16x15xf32>, vector<4x16x1xf32> -> vector<4x16x16xf32>
    %19 = vector.extract_strided_slice %10 {offsets = [0, 0, 1], sizes = [4, 16, 1], strides = [1, 1, 1]} : vector<4x16x16xf32> to vector<4x16x1xf32>
    %20 = vector.extract_strided_slice %10 {offsets = [0, 0, 0], sizes = [4, 16, 15], strides = [1, 1, 1]} : vector<4x16x16xf32> to vector<4x16x15xf32>
    %21 = tpu.concatenate %19, %20 in 2 : vector<4x16x1xf32>, vector<4x16x15xf32> -> vector<4x16x16xf32>
    %22 = vector.extract_strided_slice %10 {offsets = [0, 0, 1], sizes = [4, 16, 15], strides = [1, 1, 1]} : vector<4x16x16xf32> to vector<4x16x15xf32>
    %23 = vector.extract_strided_slice %10 {offsets = [0, 0, 14], sizes = [4, 16, 1], strides = [1, 1, 1]} : vector<4x16x16xf32> to vector<4x16x1xf32>
    %24 = tpu.concatenate %22, %23 in 2 : vector<4x16x15xf32>, vector<4x16x1xf32> -> vector<4x16x16xf32>
    %25 = vector.extract_strided_slice %12 {offsets = [0, 0, 1], sizes = [4, 16, 1], strides = [1, 1, 1]} : vector<4x16x16xf32> to vector<4x16x1xf32>
    %26 = vector.extract_strided_slice %12 {offsets = [0, 0, 0], sizes = [4, 16, 15], strides = [1, 1, 1]} : vector<4x16x16xf32> to vector<4x16x15xf32>
    %27 = tpu.concatenate %25, %26 in 2 : vector<4x16x1xf32>, vector<4x16x15xf32> -> vector<4x16x16xf32>
    %28 = vector.extract_strided_slice %12 {offsets = [0, 0, 1], sizes = [4, 16, 15], strides = [1, 1, 1]} : vector<4x16x16xf32> to vector<4x16x15xf32>
    %29 = vector.extract_strided_slice %12 {offsets = [0, 0, 14], sizes = [4, 16, 1], strides = [1, 1, 1]} : vector<4x16x16xf32> to vector<4x16x1xf32>
    %30 = tpu.concatenate %28, %29 in 2 : vector<4x16x15xf32>, vector<4x16x1xf32> -> vector<4x16x16xf32>
    %31 = arith.maximumf %15, %9 : vector<4x16x16xf32>
    %32 = arith.maximumf %31, %18 : vector<4x16x16xf32>
    %33 = arith.minimumf %21, %10 : vector<4x16x16xf32>
    %34 = arith.minimumf %33, %24 : vector<4x16x16xf32>
    %35 = arith.minimumf %27, %12 : vector<4x16x16xf32>
    %36 = arith.maximumf %27, %12 : vector<4x16x16xf32>
    %37 = arith.minimumf %36, %30 : vector<4x16x16xf32>
    %38 = arith.maximumf %35, %37 : vector<4x16x16xf32>
    %39 = arith.minimumf %32, %38 : vector<4x16x16xf32>
    %40 = arith.maximumf %32, %38 : vector<4x16x16xf32>
    %41 = arith.minimumf %40, %34 : vector<4x16x16xf32>
    %42 = arith.maximumf %39, %41 : vector<4x16x16xf32>
    %c0_2 = arith.constant 0 : index
    %c0_3 = arith.constant 0 : index
    %c0_4 = arith.constant 0 : index
    %43 = vector.load %arg2[%c0_2, %c0_3, %c0_4] : memref<4x16x16xf32, #tpu.memory_space<vmem>>, vector<4x16x16xf32>
    tpu.vector_store %arg2[%c0_2, %c0_3, %c0_4], %42 {strides = array<i32>} : memref<4x16x16xf32, #tpu.memory_space<vmem>>, vector<4x16x16xf32>,
    return
  }
  func.func @transform_0(%arg0: i32) -> (i32, i32, i32) {
    %c0_i32 = arith.constant 0 : i32
    %c0_i32_0 = arith.constant 0 : i32
    %c0_i32_1 = arith.constant 0 : i32
    return %arg0, %c0_i32, %c0_i32_0 : i32, i32, i32
  }
  func.func @transform_1(%arg0: i32) -> (i32, i32, i32) {
    %c0_i32 = arith.constant 0 : i32
    %c0_i32_0 = arith.constant 0 : i32
    %c0_i32_1 = arith.constant 0 : i32
    return %arg0, %c0_i32, %c0_i32_0 : i32, i32, i32
  }
}

</mosaic_0001>

<bundles_post_ra>
// kernel: tpu_custom_call.1
= control target key start
LH: loop header
LB: loop body
LE: loop exit
PB: predicated region body
PF: predicated region fallthrough
CT: control target
= control target key end

     0   :  { %6 = vsyncpa [#allocation3], 0  ;;  %s1508_s0 = inlined_call_operand.hbm [shape: f32[8,16,16], index: 0, kind: input, shape index: {}]   ;;  %s1509_s1 = inlined_call_operand.hbm [shape: f32[8,16,16], index: 1, kind: output, shape index: {}]  }
   0x1   :  { %8 = vsyncpa [#allocation3 + $0x1], 0 }
   0x2   :  { %9 = vsyncpa [#allocation4], 0 }
   0x3   :  { %11 = vsyncpa [#allocation4 + $0x1], 0  ;;  %s859_s6 = smov 0   ;;  %s861_s7 = smov 0  }
   0x4   :  { %s863_s8 = smov 0   ;;  %s865_s9 = smov 0  }
   0x5 LB: > { %s880_s10 = sadd.s32 4294967295, %s839_s9   ;;  %s671_s11 = sadd.s32 4294967294, %s839_s9   ;;  %s839_s9 = sphi %s865_s9, %s1528_s9   ;;  %s835_s8 = sphi %s863_s8, %s1527_s8   ;;  %s831_s7 = sphi %s861_s7, %s1526_s7   ;;  %s827_s6 = sphi %s859_s6, %s1525_s6  }
   0x6   : > { %s884_s12 = sadd.s32 1, %s839_s9   ;;  %s24_s13 = sadd.s32 1, %s835_s8 }
   0x7   : > { %s21_s14 = ssub.s32 %s839_s9, %s884_s12  ;;  %p31_p0 = scmp.ne.s32.totalorder %s835_s8, %s831_s7 }
   0x8   : > { %p22_p1 = scmp.eq.s32.totalorder %s21_s14, 0  ;;  %p32_p2 = scmp.eq.s32.totalorder %s839_s9, 0 }
   0x9   : > { %p37_p3 = scmp.ne.s32.totalorder %s831_s7, %s827_s6  ;;  %p38_p4 = scmp.eq.s32.totalorder %s880_s10, 0 }
   0xa   : > { %s896_s15 = scalar_select %p22_p1, %s835_s8, %s24_s13  }
   0xb   : > { %p898_p5 = por %p32_p2, %p31_p0  ;;  %p902_p6 = por %p38_p4, %p37_p3 }
   0xc   : > { %p61_p7 = scmp.eq.s32.totalorder %s880_s10, 1  ;;  %p67_p8 = scmp.eq.s32.totalorder %s671_s11, 1 }
   0xd   : > { %p703_p10 = scmp.lt.s32.totalorder %s839_s9, 2  ;;  %s87_s20 = sand.u32 1, %s835_s8  }
   0xe   : > { %p909_p11 = por %p61_p7, %p31_p0  ;;  %p913_p12 = por %p67_p8, %p37_p3 }
   0xf   : > { %s688_s21 = sshll.u32 %s839_s9, 10  ;;  %s674_s22 = sshll.u32 %s87_s20, 6 }
  0x10   : > { %s1515_s18 = scalar_select %p909_p11, 1, 0 }
  0x11   : > { %s1516_s19 = scalar_select %p913_p12, 1, 0 }
  0x12   : > { %s922_s25 = scalar_lea.hbm %s1508_s0, %s688_s21  ;;  %s91_s26 = scalar_lea.vmem [#allocation2], %s674_s22 }
  0x13   : > { %s99_s27 = sshll.u32 %s91_s26, 4  ;;  %p926_p13 = pnand %p703_p10, %p898_p5  ;;  %s930_s27 = int_to_ptr.vmem [resolvable:$true] %s99_s27 }
  0x14   : > { %s932_s29 = scalar_lea.sflag [#allocation3], %s87_s20  ;;  %s743_s30 = scalar_lea.hbm %s922_s25, 1024 }
  0x15   : > { %p744_p0 = scmp.ne.s32.totalorder %s922_s25, %s743_s30  ;;  %p745_p1 = pneg %p926_p13 }
  0x16   : > { %s748_s4 = scalar_lea.hbm %s1508_s0, 2048  ;;  %p749_p4 = scmp.lt.u32.totalorder %s922_s25, %s1508_s0 }
  0x17   : > { %p746_p2 = pnand %p745_p1, %p744_p0  ;;  %p750_p5 = scmp.lt.u32.totalorder %s748_s4, %s743_s30 }
  0x18   : > { %p752_p8 = scmp.lt.u32.totalorder %s743_s30, %s922_s25 }
  0x19   : > { %p747_p3 = pneg %p746_p2  ;;  %p751_p7 = por %p750_p5, %p749_p4 }
  0x1b   : > { %p753_p10 = por %p752_p8, %p751_p7 }
  0x1d   : > { %p754_p9 = pnand %p753_p10, %p747_p3 }
  0x1f   : > { %757 = shalt.err (!%p754_p9)
}
  0x20   : > { %s758_s13 = scalar_lea.vmem %s930_s27, 1024  ;;  %s841_s14 = smov [#allocation2]  }
  0x21   : > { %p759_p0 = scmp.ne.s32.totalorder %s930_s27, %s758_s13  ;;  %s763_s16 = sshll.u32 %s841_s14, 4  ;;  %s764_s16 = int_to_ptr.vmem [resolvable:$false] %s763_s16 }
  0x22   : > { %s765_s20 = scalar_lea.vmem %s764_s16, 2048  ;;  %p766_p11 = scmp.lt.s32.totalorder %s930_s27, %s764_s16 }
  0x23   : > { %p761_p2 = pnand %p759_p0, %p745_p1  ;;  %p767_p4 = scmp.lt.s32.totalorder %s765_s20, %s758_s13 }
  0x25   : > { %p762_p12 = pneg %p761_p2  ;;  %p768_p5 = por %p767_p4, %p766_p11 }
  0x27   : > { %p769_p7 = pnand %p768_p5, %p762_p12 }
  0x29   : > { %772 = shalt.err (!%p769_p7)
}
  0x2a   : > { %s842_s21 = smov 128   ;;  %s843_s22 = smov 8  }
  0x2b   : > { %698 = dma.hbm_to_vmem [thread:$0]  (!%p926_p13), %s922_s25, 1024, %s930_s27, %s932_s29, %s842_s21, %s842_s21, %s843_s22  }
  0x2c   : > { %p678_p9 = scmp.ge.s32.totalorder %s839_s9, 1  ;;  %p107_p1 = scmp.lt.s32.totalorder %s839_s9, 3 }
  0x2e   : > { %p108_p3 = pnand %p678_p9, %p107_p1 }
  0x30   : > { %111 = sbr.rel (%p108_p3) target bundleno = 299 (0x12b), region = 24 }
  0x37   : > { %s963_s23 = sand.u32 1, %s831_s7  }
  0x38   : > { %s679_s24 = sshll.u32 %s963_s23, 6  ;;  %s114_s26 = scalar_lea.sflag [#allocation3], %s963_s23 }
  0x39   : > { %s969_s30 = scalar_lea.vmem [#allocation2], %s679_s24 }
  0x3a   : > { %818 = dma.done.wait (%p902_p6), %s114_s26, 1024  }
  0x3b   : > { %820 = vsyncadd (%p902_p6), %s114_s26, 4294966272  ;;  %v976_v0 = vld [vmem:[%s969_s30 + $0x10] sm:$0xff]  ;;  %v979_v1 = vld [vmem:[%s969_s30 + $0x18] sm:$0xff]  ;;  %vm162_vm0 = vcmask 1040384   ;;  %vm187_vm1 = vcmask 1046528   ;;  %s844_s17 = smov 127  }
  0x3c   : > { %v982_v2 = vld [vmem:[%s969_s30] sm:$0xff]  ;;  %v151_v3 = vrot.slane %v976_v0, 1  ;;  %v166_v4 = vrot.slane %v976_v0, 7  ;;  %v190_v5 = vrot.slane %v979_v1, 1  ;;  %v139_v6 = vld [vmem:[%s969_s30 + $0x8] sm:$0xff]  ;;  %v167_v11 = vrot.slane %v979_v1, 7 }
  0x3d   : > { %v150_v7 = vrot.slane %v982_v2, 1  ;;  %v990_v8 = vld [vmem:[%s969_s30 + $0x20] sm:$0xff]  ;;  %v163_v9 = vrot.slane %v982_v2, 7  ;;  %v188_v10 = vrot.slane %v139_v6, 1  ;;  %v995_v12 = vld [vmem:[%s969_s30 + $0x28] sm:$0xff]  ;;  %v164_v15 = vrot.slane %v139_v6, 7 }
  0x3e   : > { %v184_v13 = vsel %vm162_vm0, %v151_v3, %v166_v4  ;;  %v999_v14 = vsel %vm187_vm1, %v151_v3, %v190_v5  ;;  %v169_v19 = vrot.slane %v990_v8, 7  ;;  %v168_v21 = vsel %vm162_vm0, %v166_v4, %v167_v11  ;;  %v144_v26 = vld [vmem:[%s969_s30 + $0x30] sm:$0xff]  ;;  %v145_v32 = vld [vmem:[%s969_s30 + $0x38] sm:$0xff]  ;;  %s845_s25 = smov 1   ;;  %s1404_s27 = scalar_lea.vmem [#allocation5], %s679_s24 }
  0x3f   : > { %v1002_v16 = vmin.f32 %v184_v13, %v976_v0  ;;  %v183_v17 = vsel %vm162_vm0, %v150_v7, %v163_v9  ;;  %v1006_v18 = vsel %vm187_vm1, %v150_v7, %v188_v10  ;;  %v1012_v22 = vsel %vm187_vm1, %v190_v5, %v167_v11  ;;  %s690_s28 = sshll.u32 %s880_s10, 10  ;;  %s598_s29 = sshll.u32 %s1404_s27, 4  ;;  %s1460_s29 = int_to_ptr.vmem [resolvable:$true] %s598_s29 }
  0x40   : > { %v212_v20 = vmin.f32 %v183_v17, %v982_v2  ;;  %v170_v23 = vrot.slane %v995_v12, 7  ;;  %v215_v25 = vmin.f32 %v168_v21, %v979_v1  ;;  %v165_v28 = vsel %vm162_vm0, %v163_v9, %v164_v15  ;;  %s1458_s4 = scalar_lea.hbm %s1509_s1, %s690_s28  ;;  %s584_s10 = scalar_lea.sflag [#allocation4], %s963_s23 }
  0x41   : > { %v1017_v24 = vmin.f32 %v1002_v16, %v999_v14  ;;  %v1026_v29 = vsel %vm187_vm1, %v188_v10, %v164_v15  ;;  %v213_v31 = vmin.f32 %v165_v28, %v139_v6  ;;  %v192_v34 = vrot.slane %v995_v12, 1  ;;  %s773_s5 = scalar_lea.vmem %s1460_s29, 1024  ;;  %p1522_p11 = scmp.ne.s32.totalorder %s1515_s18, 0 }
  0x42   : > { %v1022_v27 = vmin.f32 %v212_v20, %v1006_v18  ;;  %v1031_v30 = vmin.f32 %v215_v25, %v1012_v22  ;;  %v171_v33 = vsel %vm162_vm0, %v169_v19, %v170_v23  ;;  %v152_v35 = vrot.slane %v990_v8, 1  ;;  %p774_p6 = scmp.ne.s32.totalorder %s1460_s29, %s773_s5  ;;  %s846_s11 = smov [#allocation5]  }
  0x43   : > { %272 = vrot.lane.b32.xlu1 %v1017_v24, %s844_s17  ;;  %v172_v36 = vrot.slane %v144_v26, 7  ;;  %v1040_v37 = vmin.f32 %v213_v31, %v1026_v29  ;;  %v217_v38 = vmin.f32 %v171_v33, %v995_v12  ;;  %v1044_v39 = vsel %vm187_vm1, %v192_v34, %v170_v23  ;;  %s777_s13 = sshll.u32 %s846_s11, 4  ;;  %s778_s13 = int_to_ptr.vmem [resolvable:$false] %s777_s13 }
  0x44   : > { %268 = vrot.lane.b32.xlu0 %v1022_v27, %s844_s17  ;;  %v185_v40 = vsel %vm162_vm0, %v152_v35, %v169_v19  ;;  %v1048_v41 = vsel %vm187_vm1, %v152_v35, %v192_v34  ;;  %v173_v42 = vrot.slane %v145_v32, 7  ;;  %v194_v46 = vrot.slane %v145_v32, 1  ;;  %p775_p12 = pnand %p774_p6, %p1522_p11  ;;  %s779_s14 = scalar_lea.vmem %s778_s13, 2048 }
  0x45   : > { %v1053_v43 = vmin.f32 %v217_v38, %v1044_v39  ;;  %v216_v44 = vmin.f32 %v185_v40, %v990_v8  ;;  %v153_v47 = vrot.slane %v144_v26, 1  ;;  %v221_v56 = vmax.f32 %v165_v28, %v139_v6  ;;  %p780_p8 = scmp.lt.s32.totalorder %s1460_s29, %s778_s13  ;;  %p781_p10 = scmp.lt.s32.totalorder %s779_s14, %s773_s5 }
  0x46   : > { %v174_v45 = vsel %vm162_vm0, %v172_v36, %v173_v42  ;;  %v1063_v50 = vsel %vm187_vm1, %v194_v46, %v173_v42  ;;  %v220_v57 = vmax.f32 %v183_v17, %v982_v2  ;;  %v223_v58 = vmax.f32 %v168_v21, %v979_v1  ;;  %p776_p13 = pneg %p775_p12 }
  0x47   : > { %274 = vrot.lane.b32.xlu1 %v1031_v30, %s844_s17  ;;  %v1060_v48 = vmin.f32 %v216_v44, %v1048_v41  ;;  %v219_v49 = vmin.f32 %v174_v45, %v145_v32  ;;  %v186_v51 = vsel %vm162_vm0, %v153_v47, %v172_v36  ;;  %v1067_v52 = vsel %vm187_vm1, %v153_v47, %v194_v46  ;;  %p782_p0 = por %p781_p10, %p780_p8 }
  0x48   : > { %270 = vrot.lane.b32.xlu0 %v1040_v37, %s844_s17  ;;  %v218_v54 = vmin.f32 %v186_v51, %v144_v26  ;;  %v245_v59 = vmin.f32 %v221_v56, %v1026_v29  ;;  %v222_v60 = vmax.f32 %v184_v13, %v976_v0  ;;  %v244_v61 = vmin.f32 %v220_v57, %v1006_v18 }
  0x49   : > { %v1072_v53 = vmin.f32 %v219_v49, %v1063_v50  ;;  %v247_v62 = vmin.f32 %v223_v58, %v1012_v22  ;;  %v225_v63 = vmax.f32 %v171_v33, %v995_v12  ;;  %v224_v3 = vmax.f32 %v185_v40, %v990_v8  ;;  %p783_p2 = pnand %p782_p0, %p776_p13 }
  0x4a   : > { %v1077_v55 = vmin.f32 %v218_v54, %v1067_v52  ;;  %v1096_v1 = vmax.f32 %v213_v31, %v245_v59  ;;  %v246_v2 = vmin.f32 %v222_v60, %v999_v14  ;;  %v1102_v0 = vmax.f32 %v212_v20, %v244_v61 }
  0x4b   : > { %278 = vrot.lane.b32.xlu1 %v1053_v43, %s844_s17  ;;  %v249_v4 = vmin.f32 %v225_v63, %v1044_v39  ;;  %v227_v5 = vmax.f32 %v174_v45, %v145_v32  ;;  %v1107_v6 = vmax.f32 %v215_v25, %v247_v62  ;;  %v248_v7 = vmin.f32 %v224_v3, %v1048_v41 }
  0x4c   : > { %276 = vrot.lane.b32.xlu0 %v1060_v48, %s844_s17  ;;  %v226_v9 = vmax.f32 %v186_v51, %v144_v26  ;;  %v1113_v8 = vmax.f32 %v1002_v16, %v246_v2  ;;  %v1160_v17 = vmax.f32 %v221_v56, %v1026_v29  ;;  %v1165_v19 = vmax.f32 %v220_v57, %v1006_v18 }
  0x4d   : > { %v251_v10 = vmin.f32 %v227_v5, %v1063_v50  ;;  %v1118_v11 = vmax.f32 %v217_v38, %v249_v4  ;;  %v1123_v13 = vmax.f32 %v216_v44, %v248_v7  ;;  %v1170_v20 = vmax.f32 %v223_v58, %v1012_v22 }
  0x4e   : > { %v250_v12 = vmin.f32 %v226_v9, %v1067_v52  ;;  %v1175_v21 = vmax.f32 %v222_v60, %v999_v14  ;;  %v1180_v23 = vmax.f32 %v225_v63, %v1044_v39  ;;  %v1185_v18 = vmax.f32 %v224_v3, %v1048_v41 }
  0x4f   : > { %282 = vrot.lane.b32.xlu1 %v1072_v53, %s844_s17  ;;  %v1127_v15 = vmax.f32 %v219_v49, %v251_v10  ;;  %v1190_v22 = vmax.f32 %v227_v5, %v1063_v50  ;;  %v1195_v14 = vmax.f32 %v226_v9, %v1067_v52  ;;  %vm316_vm2 = vcmask 7168  }
  0x50   : > { %280 = vrot.lane.b32.xlu0 %v1077_v55, %s844_s17  ;;  %v1131_v16 = vmax.f32 %v218_v54, %v250_v12  ;;  %vm325_vm3 = vcmask 121856   ;;  %vm574_vm4 = vcmask 130048  }
  0x51   : > { %1518 = vst [vmem:[#allocation8_spill] sm:$0xff] %v1190_v22  ;;  %1519 = vst [vmem:[#allocation9_spill] sm:$0xff] %v1195_v14 }
  0x53   : > { %294 = vrot.lane.b32.xlu1 %v1040_v37, %s845_s25 }
  0x54   : > { %292 = vrot.lane.b32.xlu0 %v1022_v27, %s845_s25 }
  0x57   : > { %298 = vrot.lane.b32.xlu1 %v1031_v30, %s845_s25 }
  0x58   : > { %296 = vrot.lane.b32.xlu0 %v1017_v24, %s845_s25 }
  0x5b   : > { %416 = vrot.lane.b32.xlu1 %v1096_v1, %s844_s17 }
  0x5c   : > { %414 = vrot.lane.b32.xlu0 %v1102_v0, %s844_s17 }
  0x5f   : > { %420 = vrot.lane.b32.xlu1 %v1107_v6, %s844_s17 }
  0x60   : > { %418 = vrot.lane.b32.xlu0 %v1113_v8, %s844_s17 }
  0x63   : > { %424 = vrot.lane.b32.xlu1 %v1118_v11, %s844_s17 }
  0x64   : > { %422 = vrot.lane.b32.xlu0 %v1123_v13, %s844_s17 }
  0x67   : > { %428 = vrot.lane.b32.xlu1 %v1127_v15, %s844_s17 }
  0x68   : > { %426 = vrot.lane.b32.xlu0 %v1131_v16, %s844_s17 }
  0x6b   : > { %440 = vrot.lane.b32.xlu1 %v1096_v1, %s845_s25 }
  0x6c   : > { %438 = vrot.lane.b32.xlu0 %v1102_v0, %s845_s25 }
  0x6f   : > { %444 = vrot.lane.b32.xlu1 %v1107_v6, %s845_s25 }
  0x70   : > { %442 = vrot.lane.b32.xlu0 %v1113_v8, %s845_s25 }
  0x73   : > { %448 = vrot.lane.b32.xlu1 %v1118_v11, %s845_s25 }
  0x74   : > { %446 = vrot.lane.b32.xlu0 %v1123_v13, %s845_s25 }
  0x77   : > { %452 = vrot.lane.b32.xlu1 %v1127_v15, %s845_s25 }
  0x78   : > { %450 = vrot.lane.b32.xlu0 %v1131_v16, %s845_s25 }
  0x7b   : > { %302 = vrot.lane.b32.xlu1 %v1053_v43, %s845_s25 }
  0x7c   : > { %300 = vrot.lane.b32.xlu0 %v1060_v48, %s845_s25 }
  0x7f   : > { %306 = vrot.lane.b32.xlu1 %v1072_v53, %s845_s25 }
  0x80   : > { %304 = vrot.lane.b32.xlu0 %v1077_v55, %s845_s25 }
  0x83   : > { %344 = vrot.lane.b32.xlu1 %v1160_v17, %s844_s17 }
  0x84   : > { %342 = vrot.lane.b32.xlu0 %v1165_v19, %s844_s17 }
  0x87   : > { %348 = vrot.lane.b32.xlu1 %v1170_v20, %s844_s17 }
  0x88   : > { %346 = vrot.lane.b32.xlu0 %v1175_v21, %s844_s17 }
  0x8b   : > { %352 = vrot.lane.b32.xlu1 %v1180_v23, %s844_s17 }
  0x8c   : > { %350 = vrot.lane.b32.xlu0 %v1185_v18, %s844_s17 }
  0x8f   : > { %356 = vrot.lane.b32.xlu1 %v1190_v22, %s844_s17 }
  0x90   : > { %354 = vrot.lane.b32.xlu0 %v1195_v14, %s844_s17 }
  0x93   : > { %368 = vrot.lane.b32.xlu1 %v1160_v17, %s845_s25 }
  0x94   : > { %366 = vrot.lane.b32.xlu0 %v1165_v19, %s845_s25 }
  0x97   : > { %372 = vrot.lane.b32.xlu1 %v1170_v20, %s845_s25 }
  0x98   : > { %370 = vrot.lane.b32.xlu0 %v1175_v21, %s845_s25 }
  0x9b   : > { %376 = vrot.lane.b32.xlu1 %v1180_v23, %s845_s25 }
  0x9c   : > { %374 = vrot.lane.b32.xlu0 %v1185_v18, %s845_s25 }
  0x9f   : > { %380 = vrot.lane.b32.xlu1 %v1190_v22, %s845_s25 }
  0xa0   : > { %378 = vrot.lane.b32.xlu0 %v1195_v14, %s845_s25 }
  0xb5   : > { %v273_v25 = vpop.permute.xlu1 %272 }
  0xb6   : > { %v269_v26 = vpop.permute.xlu0 %268 }
  0xb9   : > { %v275_v28 = vpop.permute.xlu1 %274 }
  0xba   : > { %v271_v29 = vpop.permute.xlu0 %270 }
  0xbd   : > { %v1217_v31 = vpop.permute.xlu1 %278 }
  0xbe   : > { %v1219_v32 = vpop.permute.xlu0 %276 }
  0xc1   : > { %v1221_v33 = vpop.permute.xlu1 %282 }
  0xc2   : > { %v1223_v34 = vpop.permute.xlu0 %280 }
  0xc5   : > { %v295_v35 = vpop.permute.xlu1 %294 }
  0xc6   : > { %v318_v36 = vsel %vm316_vm2, %v271_v29, %v295_v35  ;;  %v327_v38 = vsel %vm325_vm3, %v271_v29, %v295_v35  ;;  %v293_v39 = vpop.permute.xlu0 %292 }
  0xc7   : > { %v479_v40 = vmax.f32 %v318_v36, %v1040_v37  ;;  %v317_v41 = vsel %vm316_vm2, %v269_v26, %v293_v39  ;;  %v326_v42 = vsel %vm325_vm3, %v269_v26, %v293_v39 }
  0xc8   : > { %v478_v44 = vmax.f32 %v317_v41, %v1022_v27 }
  0xc9   : > { %v1231_v45 = vmax.f32 %v479_v40, %v327_v38  ;;  %v299_v46 = vpop.permute.xlu1 %298 }
  0xca   : > { %v1233_v47 = vmax.f32 %v478_v44, %v326_v42  ;;  %v320_v49 = vsel %vm316_vm2, %v275_v28, %v299_v46  ;;  %v329_v50 = vsel %vm325_vm3, %v275_v28, %v299_v46  ;;  %v297_v51 = vpop.permute.xlu0 %296 }
  0xcb   : > { %v481_v52 = vmax.f32 %v320_v49, %v1031_v30  ;;  %v319_v37 = vsel %vm316_vm2, %v273_v25, %v297_v51  ;;  %v328_v54 = vsel %vm325_vm3, %v273_v25, %v297_v51 }
  0xcc   : > { %v480_v56 = vmax.f32 %v319_v37, %v1017_v24 }
  0xcd   : > { %v1241_v57 = vmax.f32 %v481_v52, %v329_v50  ;;  %v417_v27 = vpop.permute.xlu1 %416 }
  0xce   : > { %v1243_v58 = vmax.f32 %v480_v56, %v328_v54  ;;  %v415_v59 = vpop.permute.xlu0 %414 }
  0xd1   : > { %v421_v60 = vpop.permute.xlu1 %420 }
  0xd2   : > { %v419_v61 = vpop.permute.xlu0 %418 }
  0xd5   : > { %v425_v62 = vpop.permute.xlu1 %424 }
  0xd6   : > { %v423_v63 = vpop.permute.xlu0 %422 }
  0xd9   : > { %v1245_v2 = vpop.permute.xlu1 %428 }
  0xda   : > { %v1247_v3 = vpop.permute.xlu0 %426 }
  0xdd   : > { %v441_v30 = vpop.permute.xlu1 %440 }
  0xde   : > { %v439_v4 = vpop.permute.xlu0 %438  ;;  %v463_v28 = vsel %vm316_vm2, %v417_v27, %v441_v30  ;;  %v471_v44 = vsel %vm325_vm3, %v417_v27, %v441_v30 }
  0xdf   : > { %v462_v29 = vsel %vm316_vm2, %v415_v59, %v439_v4  ;;  %v519_v38 = vmax.f32 %v463_v28, %v1096_v1  ;;  %v470_v50 = vsel %vm325_vm3, %v415_v59, %v439_v4  ;;  %v511_v54 = vmin.f32 %v463_v28, %v1096_v1 }
  0xe0   : > { %v518_v39 = vmax.f32 %v462_v29, %v1102_v0  ;;  %v510_v14 = vmin.f32 %v462_v29, %v1102_v0 }
  0xe1   : > { %v445_v5 = vpop.permute.xlu1 %444  ;;  %v527_v49 = vmin.f32 %v519_v38, %v471_v44 }
  0xe2   : > { %v443_v7 = vpop.permute.xlu0 %442  ;;  %v465_v40 = vsel %vm316_vm2, %v421_v60, %v445_v5  ;;  %v526_v52 = vmin.f32 %v518_v39, %v470_v50  ;;  %v473_v22 = vsel %vm325_vm3, %v421_v60, %v445_v5 }
  0xe3   : > { %v464_v41 = vsel %vm316_vm2, %v419_v61, %v443_v7  ;;  %v521_v51 = vmax.f32 %v465_v40, %v1107_v6  ;;  %v1279_v38 = vmax.f32 %v511_v54, %v527_v49  ;;  %v472_v4 = vsel %vm325_vm3, %v419_v61, %v443_v7 }
  0xe4   : > { %v520_v37 = vmax.f32 %v464_v41, %v1113_v8  ;;  %v1283_v44 = vmax.f32 %v510_v14, %v526_v52  ;;  %v513_v0 = vmin.f32 %v465_v40, %v1107_v6  ;;  %v512_v29 = vmin.f32 %v464_v41, %v1113_v8 }
  0xe5   : > { %v449_v9 = vpop.permute.xlu1 %448  ;;  %v529_v59 = vmin.f32 %v521_v51, %v473_v22  ;;  %v543_v14 = vmin.f32 %v1231_v45, %v1279_v38  ;;  %v551_v41 = vmax.f32 %v1231_v45, %v1279_v38 }
  0xe6   : > { %v447_v24 = vpop.permute.xlu0 %446  ;;  %v467_v27 = vsel %vm316_vm2, %v425_v62, %v449_v9  ;;  %v528_v1 = vmin.f32 %v520_v37, %v472_v4  ;;  %v542_v40 = vmin.f32 %v1233_v47, %v1283_v44  ;;  %v475_v8 = vsel %vm325_vm3, %v425_v62, %v449_v9 }
  0xe7   : > { %v466_v39 = vsel %vm316_vm2, %v423_v63, %v447_v24  ;;  %v523_v60 = vmax.f32 %v467_v27, %v1118_v11  ;;  %v1299_v49 = vmax.f32 %v513_v0, %v529_v59  ;;  %v474_v52 = vsel %vm325_vm3, %v423_v63, %v447_v24 }
  0xe8   : > { %v522_v22 = vmax.f32 %v466_v39, %v1123_v13  ;;  %v1304_v50 = vmax.f32 %v512_v29, %v528_v1  ;;  %v515_v4 = vmin.f32 %v467_v27, %v1118_v11  ;;  %v514_v24 = vmin.f32 %v466_v39, %v1123_v13 }
  0xe9   : > { %v453_v10 = vpop.permute.xlu1 %452  ;;  %v531_v51 = vmin.f32 %v523_v60, %v475_v8  ;;  %v545_v63 = vmin.f32 %v1241_v57, %v1299_v49  ;;  %v550_v29 = vmax.f32 %v1233_v47, %v1283_v44  ;;  %v553_v27 = vmax.f32 %v1241_v57, %v1299_v49 }
  0xea   : > { %v451_v12 = vpop.permute.xlu0 %450  ;;  %v469_v28 = vsel %vm316_vm2, %v1245_v2, %v453_v10  ;;  %v530_v1 = vmin.f32 %v522_v22, %v474_v52  ;;  %v477_v62 = vsel %vm325_vm3, %v1245_v2, %v453_v10  ;;  %v544_v11 = vmin.f32 %v1243_v58, %v1304_v50 }
  0xeb   : > { %v468_v61 = vsel %vm316_vm2, %v1247_v3, %v451_v12  ;;  %v525_v6 = vmax.f32 %v469_v28, %v1127_v15  ;;  %v476_v2 = vsel %vm325_vm3, %v1247_v3, %v451_v12  ;;  %v1336_v22 = vmax.f32 %v515_v4, %v531_v51 }
  0xec   : > { %v524_v37 = vmax.f32 %v468_v61, %v1131_v16  ;;  %v517_v13 = vmin.f32 %v469_v28, %v1127_v15  ;;  %v1340_v52 = vmax.f32 %v514_v24, %v530_v1  ;;  %v552_v12 = vmax.f32 %v1243_v58, %v1304_v50 }
  0xed   : > { %v1249_v25 = vpop.permute.xlu1 %302  ;;  %v533_v60 = vmin.f32 %v525_v6, %v477_v62  ;;  %v516_v62 = vmin.f32 %v468_v61, %v1131_v16 }
  0xee   : > { %v1251_v26 = vpop.permute.xlu0 %300  ;;  %v322_v54 = vsel %vm316_vm2, %v1217_v31, %v1249_v25  ;;  %v532_v39 = vmin.f32 %v524_v37, %v476_v2  ;;  %v331_v15 = vsel %vm325_vm3, %v1217_v31, %v1249_v25 }
  0xef   : > { %v321_v9 = vsel %vm316_vm2, %v1219_v32, %v1251_v26  ;;  %v483_v10 = vmax.f32 %v322_v54, %v1053_v43  ;;  %v1347_v54 = vmax.f32 %v517_v13, %v533_v60  ;;  %v330_v16 = vsel %vm325_vm3, %v1219_v32, %v1251_v26 }
  0xf0   : > { %v482_v6 = vmax.f32 %v321_v9, %v1060_v48  ;;  %v1363_v4 = vmax.f32 %v516_v62, %v532_v39 }
  0xf1   : > { %v1255_v35 = vpop.permute.xlu1 %306  ;;  %v1355_v51 = vmax.f32 %v483_v10, %v331_v15 }
  0xf2   : > { %v1257_v36 = vpop.permute.xlu0 %304  ;;  %v1365_v1 = vmax.f32 %v482_v6, %v330_v16  ;;  %v324_v9 = vsel %vm316_vm2, %v1221_v33, %v1255_v35  ;;  %v333_v32 = vsel %vm325_vm3, %v1221_v33, %v1255_v35 }
  0xf3   : > { %v323_v24 = vsel %vm316_vm2, %v1223_v34, %v1257_v36  ;;  %v555_v10 = vmax.f32 %v1355_v51, %v1336_v22  ;;  %v485_v39 = vmax.f32 %v324_v9, %v1072_v53  ;;  %v332_v38 = vsel %vm325_vm3, %v1223_v34, %v1257_v36 }
  0xf4   : > { %v484_v62 = vmax.f32 %v323_v24, %v1077_v55  ;;  %v554_v45 = vmax.f32 %v1365_v1, %v1340_v52  ;;  %v547_v57 = vmin.f32 %v1355_v51, %v1336_v22  ;;  %v546_v58 = vmin.f32 %v1365_v1, %v1340_v52  ;;  %v1521_v22 = vld [vmem:[#allocation9_spill] sm:$0xff] }
  0xf5   : > { %v1263_v42 = vpop.permute.xlu1 %344 }
  0xf6   : > { %v1266_v46 = vpop.permute.xlu0 %342  ;;  %v492_v36 = vmax.f32 %v484_v62, %v332_v38 }
  0xf9   : > { %v1272_v56 = vpop.permute.xlu1 %348 }
  0xfa   : > { %v1277_v30 = vpop.permute.xlu0 %346 }
  0xfd   : > { %v1289_v5 = vpop.permute.xlu1 %352 }
  0xfe   : > { %v1295_v7 = vpop.permute.xlu0 %350 }
 0x101   : > { %v1314_v59 = vpop.permute.xlu1 %356 }
 0x102   : > { %v1322_v0 = vpop.permute.xlu0 %354 }
 0x105   : > { %v369_v8 = vpop.permute.xlu1 %368 }
 0x106   : > { %v391_v3 = vsel %vm316_vm2, %v1263_v42, %v369_v8  ;;  %v367_v43 = vpop.permute.xlu0 %366  ;;  %v399_v61 = vsel %vm325_vm3, %v1263_v42, %v369_v8 }
 0x107   : > { %v495_v48 = vmin.f32 %v391_v3, %v1160_v17  ;;  %v390_v28 = vsel %vm316_vm2, %v1266_v46, %v367_v43  ;;  %v398_v17 = vsel %vm325_vm3, %v1266_v46, %v367_v43  ;;  %v493_v3 = vmax.f32 %v485_v39, %v333_v32 }
 0x108   : > { %v494_v37 = vmin.f32 %v390_v28, %v1165_v19 }
 0x109   : > { %v503_v31 = vmin.f32 %v495_v48, %v399_v61  ;;  %v373_v25 = vpop.permute.xlu1 %372  ;;  %v557_v51 = vmax.f32 %v493_v3, %v1347_v54 }
 0x10a   : > { %v502_v26 = vmin.f32 %v494_v37, %v398_v17  ;;  %v393_v19 = vsel %vm316_vm2, %v1272_v56, %v373_v25  ;;  %v371_v42 = vpop.permute.xlu0 %370  ;;  %v401_v35 = vsel %vm325_vm3, %v1272_v56, %v373_v25  ;;  %v548_v25 = vmin.f32 %v492_v36, %v1363_v4 }
 0x10b   : > { %v559_v60 = vmin.f32 %v551_v41, %v503_v31  ;;  %v497_v46 = vmin.f32 %v393_v19, %v1170_v20  ;;  %v392_v2 = vsel %vm316_vm2, %v1277_v30, %v371_v42  ;;  %v400_v6 = vsel %vm325_vm3, %v1277_v30, %v371_v42 }
 0x10c   : > { %v558_v33 = vmin.f32 %v550_v29, %v502_v26  ;;  %v496_v13 = vmin.f32 %v392_v2, %v1175_v21  ;;  %v556_v31 = vmax.f32 %v492_v36, %v1363_v4 }
 0x10d   : > { %v567_v41 = vmax.f32 %v543_v14, %v559_v60  ;;  %v505_v20 = vmin.f32 %v497_v46, %v401_v35  ;;  %v377_v8 = vpop.permute.xlu1 %376 }
 0x10e   : > { %v566_v29 = vmax.f32 %v542_v40, %v558_v33  ;;  %v504_v56 = vmin.f32 %v496_v13, %v400_v6  ;;  %v395_v21 = vsel %vm316_vm2, %v1289_v5, %v377_v8  ;;  %v375_v53 = vpop.permute.xlu0 %374  ;;  %v403_v14 = vsel %vm325_vm3, %v1289_v5, %v377_v8 }
 0x10f   : > { %576 = vst.msk [vmem:[%s1404_s27 + $0x8] sm:$0xff] %vm574_vm4, %v567_v41  ;;  %v561_v55 = vmin.f32 %v553_v27, %v505_v20  ;;  %v499_v30 = vmin.f32 %v395_v21, %v1180_v23  ;;  %v394_v47 = vsel %vm316_vm2, %v1295_v7, %v375_v53  ;;  %v402_v43 = vsel %vm325_vm3, %v1295_v7, %v375_v53 }
 0x110   : > { %575 = vst.msk [vmem:[%s1404_s27] sm:$0xff] %vm574_vm4, %v566_v29  ;;  %v560_v44 = vmin.f32 %v552_v12, %v504_v56  ;;  %v498_v40 = vmin.f32 %v394_v47, %v1185_v18 }
 0x111   : > { %v569_v23 = vmax.f32 %v545_v63, %v561_v55  ;;  %v507_v27 = vmin.f32 %v499_v30, %v403_v14  ;;  %v381_v34 = vpop.permute.xlu1 %380  ;;  %v1520_v63 = vld [vmem:[#allocation8_spill] sm:$0xff] }
 0x112   : > { %v568_v12 = vmax.f32 %v544_v11, %v560_v44  ;;  %v506_v15 = vmin.f32 %v498_v40, %v402_v43  ;;  %v397_v18 = vsel %vm316_vm2, %v1314_v59, %v381_v34  ;;  %v379_v5 = vpop.permute.xlu0 %378  ;;  %v405_v11 = vsel %vm325_vm3, %v1314_v59, %v381_v34 }
 0x113   : > { %578 = vst.msk [vmem:[%s1404_s27 + $0x18] sm:$0xff] %vm574_vm4, %v569_v23  ;;  %v563_v49 = vmin.f32 %v555_v10, %v507_v27  ;;  %v501_v7 = vmin.f32 %v397_v18, %v1520_v63  ;;  %v396_v48 = vsel %vm316_vm2, %v1322_v0, %v379_v5  ;;  %v404_v37 = vsel %vm325_vm3, %v1322_v0, %v379_v5 }
 0x114   : > { %577 = vst.msk [vmem:[%s1404_s27 + $0x10] sm:$0xff] %vm574_vm4, %v568_v12  ;;  %v562_v50 = vmin.f32 %v554_v45, %v506_v15  ;;  %v500_v28 = vmin.f32 %v396_v48, %v1521_v22  ;;  %v549_v59 = vmin.f32 %v493_v3, %v1347_v54 }
 0x115   : > { %v571_v16 = vmax.f32 %v547_v57, %v563_v49  ;;  %v509_v61 = vmin.f32 %v501_v7, %v405_v11 }
 0x116   : > { %v570_v52 = vmax.f32 %v546_v58, %v562_v50  ;;  %v508_v1 = vmin.f32 %v500_v28, %v404_v37 }
 0x117   : > { %580 = vst.msk [vmem:[%s1404_s27 + $0x28] sm:$0xff] %vm574_vm4, %v571_v16  ;;  %v565_v17 = vmin.f32 %v557_v51, %v509_v61 }
 0x118   : > { %579 = vst.msk [vmem:[%s1404_s27 + $0x20] sm:$0xff] %vm574_vm4, %v570_v52  ;;  %v564_v0 = vmin.f32 %v556_v31, %v508_v1 }
 0x119   : > { %v573_v9 = vmax.f32 %v549_v59, %v565_v17 }
 0x11a   : > { %v572_v54 = vmax.f32 %v548_v25, %v564_v0 }
 0x11b   : > { %582 = vst.msk [vmem:[%s1404_s27 + $0x38] sm:$0xff] %vm574_vm4, %v573_v9 }
 0x11c   : > { %581 = vst.msk [vmem:[%s1404_s27 + $0x30] sm:$0xff] %vm574_vm4, %v572_v54 }
 0x11d   : > { %786 = shalt.err (!%p783_p2)
}
 0x11e   : > { %s787_s16 = scalar_lea.hbm %s1458_s4, 1024  ;;  %s791_s22 = scalar_lea.hbm %s1509_s1, 2048 }
 0x11f   : > { %p788_p4 = scmp.ne.s32.totalorder %s1458_s4, %s787_s16  ;;  %p792_p9 = scmp.lt.u32.totalorder %s1458_s4, %s1509_s1 }
 0x120   : > { %p793_p1 = scmp.lt.u32.totalorder %s791_s22, %s787_s16  ;;  %p795_p6 = scmp.lt.u32.totalorder %s787_s16, %s1458_s4 }
 0x121   : > { %p789_p5 = pnand %p788_p4, %p1522_p11 }
 0x122   : > { %p794_p3 = por %p793_p1, %p792_p9 }
 0x123   : > { %p790_p7 = pneg %p789_p5 }
 0x124   : > { %p796_p12 = por %p795_p6, %p794_p3 }
 0x126   : > { %p797_p13 = pnand %p796_p12, %p790_p7 }
 0x128   : > { %800 = shalt.err (!%p797_p13)
}
 0x129   : > { %s847_s30 = smov 128   ;;  %s848_s17 = smov 8  }
 0x12a   : > { %693 = dma.vmem_to_hbm [thread:$0]  (%p1522_p11), %s1460_s29, 1024, %s1458_s4, %s584_s10, %s847_s30, %s847_s30, %s848_s17  }
 0x12b PF: > { %s613_s25 = sand.u32 1, %s827_s6   ;;  %p1523_p8 = scmp.ne.s32.totalorder %s1516_s19, 0 }
 0x12c   : > { %p1524_p10 = scmp.ge.s32.totalorder %s839_s9, 2  ;;  %s614_s27 = scalar_lea.sflag [#allocation4], %s613_s25 }
 0x12e   : > { %p700_p0 = pnand %p1524_p10, %p1523_p8 }
 0x130   : > { %822 = dma.done.wait (!%p700_p0), %s614_s27, 1024  }
 0x131   : > { %824 = vsyncadd (!%p700_p0), %s614_s27, 4294966272  ;;  %p14_p2 = scmp.ge.s32.totalorder %s884_s12, 4   ;;  %s1525_s6 = smov %s831_s7 }
 0x132   : > { %s1526_s7 = smov %s835_s8  ;;  %s1527_s8 = smov %s896_s15 }
 0x133   : > { %s1528_s9 = smov %s884_s12  ;;  %16 = sbr.rel (!%p14_p2) target bundleno = 5 (0x5), region = 69 }
 0x13a   :  { %619 = vsyncpa [#allocation3], 1 }
 0x13b   :  { %621 = vsyncpa [#allocation3 + $0x1], 1 }
 0x13c   :  { %622 = vsyncpa [#allocation4], 1 }
 0x13d   :  { %624 = vsyncpa [#allocation4 + $0x1], 1 }

</bundles_post_ra>
